<compile_context>
chip_gen: v6e
topology: v6e:2x2x1
jax: 0.10.0
libtpu: 0.0.40
codegen_flags: <defaults>
</compile_context>

<pallas_src>
import functools

import jax
import jax.numpy as jnp
from jax.experimental import pallas as pl
from jax.experimental.pallas import tpu as pltpu

LANES = 128
SUBLANES = 8


def _masked_mse_kernel(pred_ref, tgt_ref, mask_ref, sum_ref, cnt_ref,
                       *, total_rows, rows_per_tile, needs_tail_mask):
    s = pl.program_id(1)  # reduction ("arbitrary") axis

    @pl.when(s == 0)
    def _():
        sum_ref[...] = jnp.zeros_like(sum_ref)
        cnt_ref[...] = jnp.zeros_like(cnt_ref)

    d = pred_ref[...].astype(jnp.float32) - tgt_ref[...].astype(jnp.float32)
    m = mask_ref[...].astype(jnp.float32)
    sq = d * d * m

    if needs_tail_mask:
        # Logical (unclamped) tile index; rows at/after `total_rows` are either
        # out-of-bounds garbage or duplicated data from a clamped block index.
        # Either way, select them to zero (jnp.where also kills NaN garbage).
        tile = pl.program_id(0) * pl.num_programs(1) + s
        remaining = total_rows - tile * rows_per_tile
        row_ids = jax.lax.broadcasted_iota(jnp.int32, sq.shape, 0)
        valid = row_ids < remaining
        sq = jnp.where(valid, sq, 0.0)
        m = jnp.where(valid, m, 0.0)

    # Fold (rows_per_tile, 128) -> (8, 128): pure vreg-wise VPU adds, no XLU.
    sum_ref[...] += sq.reshape(-1, SUBLANES, LANES).sum(axis=0)
    cnt_ref[...] += m.reshape(-1, SUBLANES, LANES).sum(axis=0)


def masked_mse_loss(pred, target, mask, *, rows_per_tile=1024, n_splits=2):
    """pred, target: float arrays of matching shape (e.g. NCHW), any float dtype.
    mask: boolean array of the same shape.  Returns scalar float32 loss.
    NOTE: an all-zero mask yields NaN (0/0), matching PyTorch's mean over empty."""
    assert pred.shape == target.shape == mask.shape

    # Flatten; keep native dtypes (no f32 up-cast in HBM), mask as 1-byte int8.
    p = pred.reshape(-1)
    t = target.reshape(-1)
    m = mask.reshape(-1).astype(jnp.int8)

    n = p.shape[0]
    # Pad to a 32x128-element multiple so rows % 32 == 0 (int8-friendly tiles).
    base = 4 * SUBLANES * LANES
    n_pad = pl.cdiv(n, base) * base
    pad = n_pad - n
    if pad:
        p = jnp.pad(p, (0, pad))
        t = jnp.pad(t, (0, pad))
        m = jnp.pad(m, (0, pad))  # padded mask = 0 -> no contribution

    rows = n_pad // LANES
    p2 = p.reshape(rows, LANES)
    t2 = t.reshape(rows, LANES)
    m2 = m.reshape(rows, LANES)

    # Tile sizing: either the full row extent (small inputs) or a multiple of
    # 32 sublanes (friendly for the int8 mask layout).
    rpt = min(int(rows_per_tile), rows)
    if rpt < rows:
        rpt = max(32, (rpt // 32) * 32)

    num_tiles = pl.cdiv(rows, rpt)
    steps = pl.cdiv(num_tiles, n_splits)
    needs_tail_mask = (n_splits * steps * rpt) != rows

    def in_idx(c, s):
        # Clamp so every grid step maps to a real tile; duplicated / ragged
        # tiles are zeroed in-kernel via the logical-tile row mask.
        return (jnp.minimum(c * steps + s, num_tiles - 1), 0)

    in_spec = pl.BlockSpec((rpt, LANES), in_idx)
    out_spec = pl.BlockSpec((None, SUBLANES, LANES), lambda c, s: (c, 0, 0))

    kernel = functools.partial(
        _masked_mse_kernel,
        total_rows=rows,
        rows_per_tile=rpt,
        needs_tail_mask=needs_tail_mask,
    )

    sums, cnts = pl.pallas_call(
        kernel,
        out_shape=(
            jax.ShapeDtypeStruct((n_splits, SUBLANES, LANES), jnp.float32),
            jax.ShapeDtypeStruct((n_splits, SUBLANES, LANES), jnp.float32),
        ),
        grid_spec=pltpu.PrefetchScalarGridSpec(
            num_scalar_prefetch=0,
            grid=(n_splits, steps),
            in_specs=[in_spec, in_spec, in_spec],
            out_specs=[out_spec, out_spec],
        ),
        compiler_params=pltpu.CompilerParams(
            dimension_semantics=("parallel", "arbitrary"),
        ),
    )(p2, t2, m2)

    # Tiny final cross-lane reduce + divide outside the hot loop.
    return jnp.sum(sums) / jnp.sum(cnts)


if __name__ == "__main__":
    key = jax.random.PRNGKey(0)
    k1, k2, k3 = jax.random.split(key, 3)

    # Small NCHW-like shapes: batch=2, channels=4, spatial=16x16
    shape = (2, 4, 16, 16)
    pred = jax.random.normal(k1, shape, dtype=jnp.float32)
    target = jax.random.normal(k2, shape, dtype=jnp.float32)
    mask = jax.random.uniform(k3, shape) > 0.5  # boolean mask

    loss = masked_mse_loss(pred, target, mask)
    loss = jax.block_until_ready(loss)

    # Reference check in plain JAX
    diff = (pred - target).astype(jnp.float32)
    mf = mask.astype(jnp.float32)
    ref = jnp.sum(diff * diff * mf) / jnp.sum(mf)
    assert jnp.allclose(loss, ref, rtol=1e-5, atol=1e-6), (loss, ref)

    print("KERNEL_OK")
</pallas_src>

<mosaic_0001>
module attributes {stable_mosaic.version = 11 : i64} {
  func.func @_masked_mse_kernel(%arg0: i32, %arg1: i32, %arg2: memref<32x128xf32, #tpu.memory_space<vmem>>, %arg3: memref<32x128xf32, #tpu.memory_space<vmem>>, %arg4: memref<32x128xi8, #tpu.memory_space<vmem>>, %arg5: memref<1x8x128xf32, #tpu.memory_space<vmem>>, %arg6: memref<1x8x128xf32, #tpu.memory_space<vmem>>) attributes {dimension_semantics = [#tpu.dimension_semantics<parallel>, #tpu.dimension_semantics<arbitrary>], iteration_bounds = array<i64: 2, 1>, scalar_prefetch = 0 : i64, scratch_operands = 0 : i64, tpu.core_type = #tpu.core_type<tc>, window_params = [{transform_indices = @transform_0, window_bounds = array<i64: 32, 128>}, {transform_indices = @transform_1, window_bounds = array<i64: 32, 128>}, {transform_indices = @transform_2, window_bounds = array<i64: 32, 128>}, {transform_indices = @transform_3, window_bounds = array<i64: 1, 8, 128>}, {transform_indices = @transform_4, window_bounds = array<i64: 1, 8, 128>}]} {
    %c0_i32 = arith.constant 0 : i32
    %0 = arith.cmpi eq, %arg1, %c0_i32 : i32
    %1 = arith.extui %0 : i1 to i32
    %c0_i32_0 = arith.constant 0 : i32
    %2 = arith.cmpi ne, %1, %c0_i32_0 : i32
    scf.if %2 {
      %cst_22 = arith.constant 0.000000e+00 : f32
      %37 = vector.broadcast %cst_22 : f32 to vector<8x128xf32>
      %c0_23 = arith.constant 0 : index
      %c0_24 = arith.constant 0 : index
      %c0_25 = arith.constant 0 : index
      %38 = vector.load %arg5[%c0_23, %c0_24, %c0_25] : memref<1x8x128xf32, #tpu.memory_space<vmem>>, vector<1x8x128xf32>
      %39 = vector.shape_cast %38 : vector<1x8x128xf32> to vector<8x128xf32>
      %40 = vector.shape_cast %37 : vector<8x128xf32> to vector<1x8x128xf32>
      tpu.vector_store %arg5[%c0_23, %c0_24, %c0_25], %40 {strides = array<i32>} : memref<1x8x128xf32, #tpu.memory_space<vmem>>, vector<1x8x128xf32>,
      %cst_26 = arith.constant 0.000000e+00 : f32
      %41 = vector.broadcast %cst_26 : f32 to vector<8x128xf32>
      %c0_27 = arith.constant 0 : index
      %c0_28 = arith.constant 0 : index
      %c0_29 = arith.constant 0 : index
      %42 = vector.load %arg6[%c0_27, %c0_28, %c0_29] : memref<1x8x128xf32, #tpu.memory_space<vmem>>, vector<1x8x128xf32>
      %43 = vector.shape_cast %42 : vector<1x8x128xf32> to vector<8x128xf32>
      %44 = vector.shape_cast %41 : vector<8x128xf32> to vector<1x8x128xf32>
      tpu.vector_store %arg6[%c0_27, %c0_28, %c0_29], %44 {strides = array<i32>} : memref<1x8x128xf32, #tpu.memory_space<vmem>>, vector<1x8x128xf32>,
    } else {
    }
    %c0 = arith.constant 0 : index
    %c0_1 = arith.constant 0 : index
    %3 = vector.load %arg2[%c0, %c0_1] : memref<32x128xf32, #tpu.memory_space<vmem>>, vector<32x128xf32>
    %c0_2 = arith.constant 0 : index
    %c0_3 = arith.constant 0 : index
    %4 = vector.load %arg3[%c0_2, %c0_3] : memref<32x128xf32, #tpu.memory_space<vmem>>, vector<32x128xf32>
    %5 = arith.subf %3, %4 : vector<32x128xf32>
    %c0_4 = arith.constant 0 : index
    %c0_5 = arith.constant 0 : index
    %6 = vector.load %arg4[%c0_4, %c0_5] : memref<32x128xi8, #tpu.memory_space<vmem>>, vector<32x128xi8>
    %7 = arith.sitofp %6 : vector<32x128xi8> to vector<32x128xf32>
    %8 = arith.mulf %5, %5 : vector<32x128xf32>
    %9 = arith.mulf %8, %7 : vector<32x128xf32>
    %c1_i32 = arith.constant 1 : i32
    %10 = arith.muli %arg0, %c1_i32 : i32
    %11 = arith.addi %10, %arg1 : i32
    %c32_i32 = arith.constant 32 : i32
    %12 = arith.muli %11, %c32_i32 : i32
    %c32_i32_6 = arith.constant 32 : i32
    %13 = arith.subi %c32_i32_6, %12 : i32
    %14 = tpu.iota {dimensions = array<i32: 0>} : vector<32x128xi32>
    %15 = vector.broadcast %13 : i32 to vector<32x128xi32>
    %16 = arith.cmpi slt, %14, %15 : vector<32x128xi32>
    %cst = arith.constant 0.000000e+00 : f32
    %17 = vector.broadcast %cst : f32 to vector<32x128xf32>
    %18 = arith.select %16, %9, %17 : vector<32x128xi1>, vector<32x128xf32>
    %cst_7 = arith.constant 0.000000e+00 : f32
    %19 = vector.broadcast %cst_7 : f32 to vector<32x128xf32>
    %20 = arith.select %16, %7, %19 : vector<32x128xi1>, vector<32x128xf32>
    %c0_8 = arith.constant 0 : index
    %c0_9 = arith.constant 0 : index
    %c0_10 = arith.constant 0 : index
    %21 = vector.load %arg5[%c0_8, %c0_9, %c0_10] : memref<1x8x128xf32, #tpu.memory_space<vmem>>, vector<1x8x128xf32>
    %22 = vector.shape_cast %21 : vector<1x8x128xf32> to vector<8x128xf32>
    %23 = vector.shape_cast %18 : vector<32x128xf32> to vector<4x8x128xf32>
    %cst_11 = arith.constant dense<0.000000e+00> : vector<8x128xf32>
    %24 = vector.multi_reduction <add>, %23, %cst_11 [0] : vector<4x8x128xf32> to vector<8x128xf32>
    %25 = arith.addf %22, %24 : vector<8x128xf32>
    %c0_12 = arith.constant 0 : index
    %c0_13 = arith.constant 0 : index
    %c0_14 = arith.constant 0 : index
    %26 = vector.load %arg5[%c0_12, %c0_13, %c0_14] : memref<1x8x128xf32, #tpu.memory_space<vmem>>, vector<1x8x128xf32>
    %27 = vector.shape_cast %26 : vector<1x8x128xf32> to vector<8x128xf32>
    %28 = vector.shape_cast %25 : vector<8x128xf32> to vector<1x8x128xf32>
    tpu.vector_store %arg5[%c0_12, %c0_13, %c0_14], %28 {strides = array<i32>} : memref<1x8x128xf32, #tpu.memory_space<vmem>>, vector<1x8x128xf32>,
    %c0_15 = arith.constant 0 : index
    %c0_16 = arith.constant 0 : index
    %c0_17 = arith.constant 0 : index
    %29 = vector.load %arg6[%c0_15, %c0_16, %c0_17] : memref<1x8x128xf32, #tpu.memory_space<vmem>>, vector<1x8x128xf32>
    %30 = vector.shape_cast %29 : vector<1x8x128xf32> to vector<8x128xf32>
    %31 = vector.shape_cast %20 : vector<32x128xf32> to vector<4x8x128xf32>
    %cst_18 = arith.constant dense<0.000000e+00> : vector<8x128xf32>
    %32 = vector.multi_reduction <add>, %31, %cst_18 [0] : vector<4x8x128xf32> to vector<8x128xf32>
    %33 = arith.addf %30, %32 : vector<8x128xf32>
    %c0_19 = arith.constant 0 : index
    %c0_20 = arith.constant 0 : index
    %c0_21 = arith.constant 0 : index
    %34 = vector.load %arg6[%c0_19, %c0_20, %c0_21] : memref<1x8x128xf32, #tpu.memory_space<vmem>>, vector<1x8x128xf32>
    %35 = vector.shape_cast %34 : vector<1x8x128xf32> to vector<8x128xf32>
    %36 = vector.shape_cast %33 : vector<8x128xf32> to vector<1x8x128xf32>
    tpu.vector_store %arg6[%c0_19, %c0_20, %c0_21], %36 {strides = array<i32>} : memref<1x8x128xf32, #tpu.memory_space<vmem>>, vector<1x8x128xf32>,
    return
  }
  func.func @transform_0(%arg0: i32, %arg1: i32) -> (i32, i32) {
    %c1_i32 = arith.constant 1 : i32
    %0 = arith.muli %arg0, %c1_i32 : i32
    %1 = arith.addi %0, %arg1 : i32
    %c0_i32 = arith.constant 0 : i32
    %2 = arith.minsi %1, %c0_i32 : i32
    %c0_i32_0 = arith.constant 0 : i32
    %c0_i32_1 = arith.constant 0 : i32
    return %2, %c0_i32_0 : i32, i32
  }
  func.func @transform_1(%arg0: i32, %arg1: i32) -> (i32, i32) {
    %c1_i32 = arith.constant 1 : i32
    %0 = arith.muli %arg0, %c1_i32 : i32
    %1 = arith.addi %0, %arg1 : i32
    %c0_i32 = arith.constant 0 : i32
    %2 = arith.minsi %1, %c0_i32 : i32
    %c0_i32_0 = arith.constant 0 : i32
    %c0_i32_1 = arith.constant 0 : i32
    return %2, %c0_i32_0 : i32, i32
  }
  func.func @transform_2(%arg0: i32, %arg1: i32) -> (i32, i32) {
    %c1_i32 = arith.constant 1 : i32
    %0 = arith.muli %arg0, %c1_i32 : i32
    %1 = arith.addi %0, %arg1 : i32
    %c0_i32 = arith.constant 0 : i32
    %2 = arith.minsi %1, %c0_i32 : i32
    %c0_i32_0 = arith.constant 0 : i32
    %c0_i32_1 = arith.constant 0 : i32
    return %2, %c0_i32_0 : i32, i32
  }
  func.func @transform_3(%arg0: i32, %arg1: i32) -> (i32, i32, i32) {
    %c0_i32 = arith.constant 0 : i32
    %c0_i32_0 = arith.constant 0 : i32
    %c0_i32_1 = arith.constant 0 : i32
    return %arg0, %c0_i32, %c0_i32_0 : i32, i32, i32
  }
  func.func @transform_4(%arg0: i32, %arg1: i32) -> (i32, i32, i32) {
    %c0_i32 = arith.constant 0 : i32
    %c0_i32_0 = arith.constant 0 : i32
    %c0_i32_1 = arith.constant 0 : i32
    return %arg0, %c0_i32, %c0_i32_0 : i32, i32, i32
  }
}

</mosaic_0001>

<bundles_post_ra>
// kernel: tpu_custom_call.1
= control target key start
LH: loop header
LB: loop body
LE: loop exit
PB: predicated region body
PF: predicated region fallthrough
CT: control target
= control target key end

     0   :  { %s1249_s0 = inlined_call_operand.hbm [shape: f32[32,128], index: 0, kind: input, shape index: {}]   ;;  %s1250_s1 = inlined_call_operand.hbm [shape: f32[32,128], index: 1, kind: input, shape index: {}]   ;;  %s1251_s2 = inlined_call_operand.hbm [shape: s8[32,128], index: 2, kind: input, shape index: {}]   ;;  %s1252_s3 = inlined_call_operand.hbm [shape: f32[2,8,128], index: 3, kind: output, shape index: {0}]   ;;  %s1253_s4 = inlined_call_operand.hbm [shape: f32[2,8,128], index: 4, kind: output, shape index: {1}]  }
   0x1   :  { %1259 = sst [smem:[#allocation19_spill]] %s1250_s1 }
   0x2   :  { %10 = vsyncpa [#allocation3], 0 }
   0x3   :  { %12 = vsyncpa [#allocation3 + $0x1], 0 }
   0x4   :  { %13 = vsyncpa [#allocation6], 0 }
   0x5   :  { %15 = vsyncpa [#allocation6 + $0x1], 0 }
   0x6   :  { %16 = vsyncpa [#allocation4], 0 }
   0x7   :  { %18 = vsyncpa [#allocation4 + $0x1], 0 }
   0x8   :  { %19 = vsyncpa [#allocation10], 0 }
   0x9   :  { %21 = vsyncpa [#allocation10 + $0x1], 0  ;;  %s988_s15 = smov 0   ;;  %s990_s16 = smov 0  }
   0xa   :  { %s992_s17 = smov 0   ;;  %s994_s18 = smov 0  }
   0xb   :  { %s996_s19 = smov 0   ;;  %s998_s20 = smov 0  }
   0xc   :  { %s1000_s21 = smov 0   ;;  %s1002_s22 = smov 0  }
   0xd LB: > { %1260 = sst [smem:[#allocation15_spill]] %s934_s17  ;;  %s1027_s23 = sadd.s32 4294967295, %s954_s22   ;;  %s954_s22 = sphi %s1002_s22, %s27_s22   ;;  %s950_s21 = sphi %s1000_s21, %s1281_s21   ;;  %s946_s20 = sphi %s998_s20, %s1280_s20   ;;  %s942_s19 = sphi %s996_s19, %s1239_s19   ;;  %s938_s18 = sphi %s994_s18, %s1284_s18   ;;  %s934_s17 = sphi %s992_s17, %s1279_s17   ;;  %s930_s16 = sphi %s990_s16, %s1283_s16   ;;  %s926_s15 = sphi %s988_s15, %s1282_s15  }
   0xe   : > { %1261 = sst [smem:[#allocation16_spill]] %s950_s21  ;;  %s605_s24 = sadd.s32 4294967294, %s954_s22  }
   0xf   : > { %s39_s25 = sadd.s32 1, %s950_s21  ;;  %p923_p1 = scmp.ne.s32.totalorder %s942_s19, 0 }
  0x10   : > { %p41_p0 = scmp.ge.s32.totalorder %s39_s25, 2  ;;  %p60_p2 = scmp.eq.s32.totalorder %s954_s22, 0 }
  0x11   : > { %p65_p3 = scmp.ne.s32.totalorder %s942_s19, %s938_s18  ;;  %p66_p5 = scmp.eq.s32.totalorder %s1027_s23, 0 }
  0x12   : > { %s1286_s25 = smov (%p41_p0, %s39_s25), 0  ;;  %p1036_p4 = por %p923_p1, %p60_p2 }
  0x13   : > { %1262 = sst [smem:[#allocation17_spill]] %s1286_s25  ;;  %p1041_p6 = por %p66_p5, %p65_p3 }
  0x14   : > { %s139_s28 = ssub.s32 %s950_s21, %s1286_s25  ;;  %s142_s29 = sadd.s32 1, %s934_s17 }
  0x15   : > { %s1264_s27 = scalar_select %p1041_p6, 1, 0 }
  0x16   : > { %p140_p7 = scmp.eq.s32.totalorder %s139_s28, 0  ;;  %p152_p8 = scmp.ne.s32.totalorder %s934_s17, %s930_s16 }
  0x17   : > { %p153_p9 = scmp.eq.s32.totalorder %s1027_s23, 1  ;;  %p158_p10 = scmp.ne.s32.totalorder %s930_s16, %s926_s15 }
  0x18   : > { %s1049_s30 = scalar_select %p140_p7, %s934_s17, %s142_s29  }
  0x19   : > { %p159_p11 = scmp.eq.s32.totalorder %s605_s24, 1  ;;  %p1056_p12 = por %p153_p9, %p152_p8 }
  0x1a   : > { %1265 = sst [smem:[#allocation18_spill]] %s1049_s30  ;;  %p658_p1 = scmp.lt.s32.totalorder %s954_s22, 2 }
  0x1b   : > { %s1266_s5 = scalar_select %p1056_p12, 1, 0 }
  0x1c   : > { %p1061_p0 = por %p159_p11, %p158_p10  ;;  %p1068_p2 = pnand %p658_p1, %p1036_p4 }
  0x1d   : > { %s229_s8 = sand.u32 1, %s954_s22   ;;  %s956_s9 = smov [#allocation5]  }
  0x1e   : > { %s1267_s6 = scalar_select %p1061_p0, 1, 0 }
  0x1f   : > { %s243_s10 = sshll.u32 %s956_s9, 4  ;;  %s1074_s11 = scalar_lea.sflag [#allocation6], %s229_s8  ;;  %s244_s10 = int_to_ptr.vmem [resolvable:$true] %s243_s10 }
  0x20   : > { %s1269_s1 = sld [smem:[#allocation19_spill]]  ;;  %p1084_p4 = pneg %p1068_p2 }
  0x26   : > { %s735_s14 = scalar_lea.hbm %s1269_s1, 512 }
  0x27   : > { %p736_p5 = scmp.ne.s32.totalorder %s1269_s1, %s735_s14  ;;  %p742_p9 = scmp.lt.s32.totalorder %s735_s14, %s735_s14 }
  0x29   : > { %p738_p7 = pnand %p1084_p4, %p736_p5 }
  0x2b   : > { %p739_p8 = pneg %p738_p7 }
  0x2d   : > { %p744_p10 = pnand %p742_p9, %p739_p8 }
  0x2f   : > { %747 = shalt.err (!%p744_p10)
}
  0x30   : > { %s748_s28 = scalar_lea.vmem %s244_s10, 512  ;;  %s755_s29 = scalar_lea.vmem %s244_s10, 1024 }
  0x31   : > { %p749_p11 = scmp.ne.s32.totalorder %s244_s10, %s748_s28  ;;  %p756_p3 = scmp.lt.s32.totalorder %s244_s10, %s244_s10 }
  0x32   : > { %p757_p0 = scmp.lt.s32.totalorder %s755_s29, %s748_s28 }
  0x33   : > { %p751_p1 = pnand %p749_p11, %p1084_p4 }
  0x34   : > { %p758_p12 = por %p757_p0, %p756_p3 }
  0x35   : > { %p752_p13 = pneg %p751_p1 }
  0x37   : > { %p759_p6 = pnand %p758_p12, %p752_p13 }
  0x39   : > { %762 = shalt.err (!%p759_p6)
}
  0x3a   : > { %s957_s8 = smov 128   ;;  %s958_s9 = smov 8  }
  0x3b   : > { %647 = dma.hbm_to_vmem [thread:$0]  (!%p1068_p2), %s1269_s1, 512, %s244_s10, %s1074_s11, %s957_s8, %s957_s8, %s958_s9  }
  0x3c   : > { %p272_p5 = scmp.lt.s32.totalorder %s954_s22, 3  ;;  %p1271_p7 = scmp.ge.s32.totalorder %s954_s22, 1 }
  0x3d   : > { %s959_s18 = smov [#allocation2]   ;;  %s763_s25 = scalar_lea.hbm %s1249_s0, 512 }
  0x3e   : > { %p1101_p8 = pnand %p1271_p7, %p272_p5  ;;  %s219_s24 = sshll.u32 %s959_s18, 4  ;;  %s220_s24 = int_to_ptr.vmem [resolvable:$true] %s219_s24 }
  0x3f   : > { %p764_p6 = scmp.ne.s32.totalorder %s1249_s0, %s763_s25  ;;  %p770_p0 = scmp.lt.s32.totalorder %s763_s25, %s763_s25 }
  0x40   : > { %s1272_s14 = scalar_select %p1101_p8, 1, 0 }
  0x41   : > { %p766_p12 = pnand %p764_p6, %p1084_p4 }
  0x43   : > { %p767_p13 = pneg %p766_p12 }
  0x45   : > { %p772_p3 = pnand %p770_p0, %p767_p13 }
  0x47   : > { %775 = shalt.err (!%p772_p3)
}
  0x48   : > { %s776_s10 = scalar_lea.vmem %s220_s24, 512  ;;  %s783_s12 = scalar_lea.vmem %s220_s24, 1024 }
  0x49   : > { %p777_p9 = scmp.ne.s32.totalorder %s220_s24, %s776_s10  ;;  %p784_p1 = scmp.lt.s32.totalorder %s220_s24, %s220_s24 }
  0x4a   : > { %p785_p5 = scmp.lt.s32.totalorder %s783_s12, %s776_s10 }
  0x4b   : > { %p779_p10 = pnand %p777_p9, %p1084_p4 }
  0x4c   : > { %p786_p7 = por %p785_p5, %p784_p1 }
  0x4d   : > { %p780_p11 = pneg %p779_p10 }
  0x4f   : > { %p787_p8 = pnand %p786_p7, %p780_p11 }
  0x51   : > { %790 = shalt.err (!%p787_p8)
}
  0x52   : > { %644 = dma.hbm_to_vmem [thread:$0]  (!%p1068_p2), %s1249_s0, 512, %s220_s24, [#allocation3], %s957_s8, %s957_s8, %s958_s9  }
  0x53   : > { %s960_s25 = smov [#allocation7]   ;;  %s791_s29 = scalar_lea.hbm %s1251_s2, 128 }
  0x54   : > { %s267_s13 = sshll.u32 %s960_s25, 4  ;;  %p792_p6 = scmp.ne.s32.totalorder %s1251_s2, %s791_s29  ;;  %s268_s13 = int_to_ptr.vmem [resolvable:$true] %s267_s13 }
  0x55   : > { %p798_p13 = scmp.lt.s32.totalorder %s791_s29, %s791_s29 }
  0x56   : > { %p794_p8 = pnand %p792_p6, %p1084_p4 }
  0x58   : > { %p795_p12 = pneg %p794_p8 }
  0x5a   : > { %p800_p0 = pnand %p798_p13, %p795_p12 }
  0x5c   : > { %803 = shalt.err (!%p800_p0)
}
  0x5d   : > { %s804_s10 = scalar_lea.vmem %s268_s13, 128  ;;  %s811_s8 = scalar_lea.vmem %s268_s13, 256 }
  0x5e   : > { %p805_p3 = scmp.ne.s32.totalorder %s268_s13, %s804_s10  ;;  %p812_p11 = scmp.lt.s32.totalorder %s268_s13, %s268_s13 }
  0x5f   : > { %p813_p1 = scmp.lt.s32.totalorder %s811_s8, %s804_s10 }
  0x60   : > { %p807_p9 = pnand %p805_p3, %p1084_p4 }
  0x61   : > { %p814_p5 = por %p813_p1, %p812_p11 }
  0x62   : > { %p808_p10 = pneg %p807_p9 }
  0x64   : > { %p815_p7 = pnand %p814_p5, %p808_p10 }
  0x66   : > { %818 = shalt.err (!%p815_p7)
}
  0x67   : > { %650 = dma.hbm_to_vmem [thread:$0]  (!%p1068_p2), %s1251_s2, 128, %s268_s13, %s1074_s11  }
  0x68   : > { %p1273_p6 = scmp.ne.s32.totalorder %s1272_s14, 0 }
  0x69   : > { %s1139_s26 = sand.u32 (!%p1273_p6), 1, %s942_s19   ;;  %p1274_p4 = scmp.ne.s32.totalorder (!%p1273_p6), %s1264_s27, 0 }
  0x6a   : > { %276 = sbr.rel (%p1273_p6) target bundleno = 168 (0xa8), region = 32  ;;  %s617_s9 = sshll.u32 (!%p1273_p6), %s1139_s26, 5 }
  0x6b   : > { %s279_s24 = scalar_lea.sflag (!%p1273_p6), [#allocation3], %s1139_s26  ;;  %s282_s12 = scalar_lea.vmem (!%p1273_p6), [#allocation2], %s617_s9 }
  0x6f   : > { %908 = dma.done.wait (%p1274_p4), %s279_s24, 512  }
  0x70   : > { %910 = vsyncadd (%p1274_p4), %s279_s24, 4294966784  ;;  %s287_s7 = sand.u32 1, %s1027_s23   ;;  %s291_s14 = scalar_lea.vmem [#allocation5], %s617_s9 }
  0x71   : > { %s288_s11 = scalar_lea.sflag [#allocation6], %s287_s7 }
  0x72   : > { %912 = dma.done.wait (%p1274_p4), %s288_s11, 640  }
  0x73   : > { %914 = vsyncadd (%p1274_p4), %s288_s11, 4294966656  ;;  %v389_v0 = vlaneseq  ;;  %s619_s21 = sshll.u32 %s1139_s26, 3  ;;  %s622_s30 = sshll.u32 %s946_s20, 5  ;;  %v357_v5 = vld [vmem:[%s282_s12] sm:$0xff]  ;;  %v358_v6 = vld [vmem:[%s282_s12 + $0x8] sm:$0xff] }
  0x74   : > { %s388_s25 = ssub.s32 32, %s622_s30  ;;  %v359_v7 = vld [vmem:[%s282_s12 + $0x10] sm:$0xff]  ;;  %v360_v8 = vld [vmem:[%s282_s12 + $0x18] sm:$0xff]  ;;  %v361_v9 = vld [vmem:[%s291_s14] sm:$0xff]  ;;  %s300_s23 = scalar_lea.vmem [#allocation7], %s619_s21 }
  0x75   : > { %v390_v1 = vshrl.u32 %v389_v0, 7  ;;  %v394_v4 = vstv %s388_s25  ;;  %v362_v10 = vld [vmem:[%s291_s14 + $0x8] sm:$0xff]  ;;  %v363_v12 = vld [vmem:[%s291_s14 + $0x10] sm:$0xff]  ;;  %v364_v13 = vld [vmem:[%s291_s14 + $0x18] sm:$0xff]  ;;  %v365_v14 = vsub.f32 %v357_v5, %v361_v9  ;;  %s1155_s27 = sand.u32 1, %s930_s16   ;;  %s625_s18 = sshll.u32 %s946_s20, 7 }
  0x76   : > { %v366_v15 = vsub.f32 %v358_v6, %v362_v10  ;;  %v369_v16 = vld [vmem:[%s300_s23] sm:$0xff]  ;;  %v367_v17 = vsub.f32 %v359_v7, %v363_v12  ;;  %v368_v18 = vsub.f32 %v360_v8, %v364_v13  ;;  %s620_s13 = sshll.u32 %s1155_s27, 3  ;;  %s1168_s26 = scalar_lea.hbm %s1253_s4, %s625_s18 }
  0x77   : > { %v391_v2 = vadd.s32 8, %v390_v1  ;;  %v392_v3 = vadd.s32 16, %v390_v1  ;;  %v393_v11 = vadd.s32 24, %v390_v1  ;;  %vm395_vm0 = vcmp.lt.s32.totalorder %v390_v1, %v394_v4  ;;  %s339_s28 = scalar_lea.vmem [#allocation9], %s620_s13  ;;  %s332_s10 = scalar_lea.vmem [#allocation8], %s620_s13 }
  0x78   : > { %v370_v19 = vunpack.c.0.s8 %v369_v16  ;;  %v371_v20 = vunpack.c.1.s8 %v369_v16  ;;  %v372_v21 = vunpack.c.2.s8 %v369_v16  ;;  %v373_v22 = vunpack.c.3.s8 %v369_v16  ;;  %s451_s29 = sshll.u32 %s339_s28, 4  ;;  %s438_s8 = sshll.u32 %s332_s10, 4  ;;  %s1170_s29 = int_to_ptr.vmem [resolvable:$true] %s451_s29  ;;  %s1177_s8 = int_to_ptr.vmem [resolvable:$true] %s438_s8 }
  0x79   : > { %vm396_vm1 = vcmp.lt.s32.totalorder %v391_v2, %v394_v4  ;;  %vm397_vm2 = vcmp.lt.s32.totalorder %v392_v3, %v394_v4  ;;  %v378_v23 = vmul.f32 %v365_v14, %v365_v14  ;;  %v379_v24 = vmul.f32 %v366_v15, %v366_v15  ;;  %s1175_s20 = scalar_lea.hbm %s1252_s3, %s625_s18  ;;  %s425_s12 = scalar_lea.sflag [#allocation10], %s1155_s27 }
  0x7a   : > { %v374_v25 = vcvt.s32.f32 %v370_v19  ;;  %v375_v26 = vcvt.s32.f32 %v371_v20  ;;  %v380_v27 = vmul.f32 %v367_v17, %v367_v17  ;;  %v381_v28 = vmul.f32 %v368_v18, %v368_v18  ;;  %s819_s7 = scalar_lea.vmem %s1170_s29, 128  ;;  %p1275_p8 = scmp.ne.s32.totalorder %s1266_s5, 0 }
  0x7b   : > { %v376_v29 = vcvt.s32.f32 %v372_v21  ;;  %v377_v30 = vcvt.s32.f32 %v373_v22  ;;  %vm398_vm3 = vcmp.lt.s32.totalorder %v393_v11, %v394_v4  ;;  %p820_p2 = scmp.ne.s32.totalorder %s1170_s29, %s819_s7  ;;  %s961_s11 = smov [#allocation9]  }
  0x7c   : > { %v382_v31 = vmul.f32 %v378_v23, %v374_v25  ;;  %v383_v32 = vmul.f32 %v379_v24, %v375_v26  ;;  %v403_v33 = vsel %vm395_vm0, %v374_v25, 0.0  ;;  %v404_v34 = vsel %vm396_vm1, %v375_v26, 0.0  ;;  %s823_s14 = sshll.u32 %s961_s11, 4  ;;  %s824_s14 = int_to_ptr.vmem [resolvable:$false] %s823_s14 }
  0x7d   : > { %v384_v35 = vmul.f32 %v380_v27, %v376_v29  ;;  %v385_v36 = vmul.f32 %v381_v28, %v377_v30  ;;  %v405_v37 = vsel %vm397_vm2, %v376_v29, 0.0  ;;  %v414_v40 = vadd.f32 %v404_v34, %v403_v33  ;;  %p821_p12 = pnand %p820_p2, %p1275_p8  ;;  %s825_s21 = scalar_lea.vmem %s824_s14, 256 }
  0x7e   : > { %v399_v38 = vsel %vm395_vm0, %v382_v31, 0.0  ;;  %v400_v39 = vsel %vm396_vm1, %v383_v32, 0.0  ;;  %v406_v43 = vsel %vm398_vm3, %v377_v30, 0.0  ;;  %p826_p0 = scmp.lt.s32.totalorder %s1170_s29, %s824_s14  ;;  %p827_p3 = scmp.lt.s32.totalorder %s825_s21, %s819_s7 }
  0x7f   : > { %v401_v41 = vsel %vm397_vm2, %v384_v35, 0.0  ;;  %v408_v42 = vadd.f32 %v400_v39, %v399_v38  ;;  %v402_v44 = vsel %vm398_vm3, %v385_v36, 0.0  ;;  %v415_v45 = vadd.f32 %v414_v40, %v405_v37  ;;  %p822_p13 = pneg %p821_p12 }
  0x80   : > { %p828_p9 = por %p827_p3, %p826_p0 }
  0x81   : > { %v409_v46 = vadd.f32 %v408_v42, %v401_v41  ;;  %v416_v47 = vadd.f32 %v415_v45, %v406_v43 }
  0x82   : > { %p829_p10 = pnand %p828_p9, %p822_p13 }
  0x83   : > { %v410_v48 = vadd.f32 %v409_v46, %v402_v44  ;;  %418 = vst [vmem:[%s339_s28] sm:$0xff] %v416_v47 }
  0x85   : > { %412 = vst [vmem:[%s332_s10] sm:$0xff] %v410_v48 }
  0x86   : > { %832 = shalt.err (!%p829_p10)
}
  0x87   : > { %s833_s30 = scalar_lea.hbm %s1168_s26, 128  ;;  %s837_s13 = scalar_lea.hbm %s1253_s4, 256 }
  0x88   : > { %p834_p11 = scmp.ne.s32.totalorder %s1168_s26, %s833_s30  ;;  %p838_p7 = scmp.lt.s32.totalorder %s1168_s26, %s1253_s4 }
  0x89   : > { %p839_p6 = scmp.lt.s32.totalorder %s837_s13, %s833_s30 }
  0x8a   : > { %p835_p1 = pnand %p834_p11, %p1275_p8 }
  0x8b   : > { %p840_p4 = por %p839_p6, %p838_p7 }
  0x8c   : > { %p836_p5 = pneg %p835_p1 }
  0x8e   : > { %p841_p2 = pnand %p840_p4, %p836_p5 }
  0x90   : > { %844 = shalt.err (!%p841_p2)
}
  0x91   : > { %638 = dma.vmem_to_hbm [thread:$0]  (%p1275_p8), %s1170_s29, 128, %s1168_s26, %s425_s12  }
  0x92   : > { %s420_s10 = scalar_lea.sflag [#allocation4], %s1155_s27  ;;  %s845_s1 = scalar_lea.vmem %s1177_s8, 128 }
  0x93   : > { %p846_p12 = scmp.ne.s32.totalorder %s1177_s8, %s845_s1  ;;  %s962_s17 = smov [#allocation8]  }
  0x94   : > { %s849_s9 = sshll.u32 %s962_s17, 4  ;;  %s850_s9 = int_to_ptr.vmem [resolvable:$false] %s849_s9 }
  0x95   : > { %p847_p13 = pnand %p846_p12, %p1275_p8  ;;  %s851_s24 = scalar_lea.vmem %s850_s9, 256 }
  0x96   : > { %p852_p3 = scmp.lt.s32.totalorder %s1177_s8, %s850_s9  ;;  %p853_p9 = scmp.lt.s32.totalorder %s851_s24, %s845_s1 }
  0x97   : > { %p848_p0 = pneg %p847_p13 }
  0x98   : > { %p854_p10 = por %p853_p9, %p852_p3 }
  0x9a   : > { %p855_p11 = pnand %p854_p10, %p848_p0 }
  0x9c   : > { %858 = shalt.err (!%p855_p11)
}
  0x9d   : > { %s859_s29 = scalar_lea.hbm %s1175_s20, 128  ;;  %s863_s12 = scalar_lea.hbm %s1252_s3, 256 }
  0x9e   : > { %p860_p1 = scmp.ne.s32.totalorder %s1175_s20, %s859_s29  ;;  %p864_p6 = scmp.lt.s32.totalorder %s1175_s20, %s1252_s3 }
  0x9f   : > { %p865_p4 = scmp.lt.s32.totalorder %s863_s12, %s859_s29 }
  0xa0   : > { %p861_p5 = pnand %p860_p1, %p1275_p8 }
  0xa1   : > { %p866_p2 = por %p865_p4, %p864_p6 }
  0xa2   : > { %p862_p7 = pneg %p861_p5 }
  0xa4   : > { %p867_p12 = pnand %p866_p2, %p862_p7 }
  0xa6   : > { %870 = shalt.err (!%p867_p12)
}
  0xa7   : > { %637 = dma.vmem_to_hbm [thread:$0]  (%p1275_p8), %s1177_s8, 128, %s1175_s20, %s420_s10  }
  0xa8 PF: > { %s463_s14 = sand.u32 1, %s926_s15   ;;  %p1276_p13 = scmp.ne.s32.totalorder %s1267_s6, 0 }
  0xa9   : > { %p1277_p0 = scmp.ge.s32.totalorder %s954_s22, 2  ;;  %s464_s21 = scalar_lea.sflag [#allocation4], %s463_s14 }
  0xab   : > { %p652_p3 = pnand %p1277_p0, %p1276_p13 }
  0xad   : > { %p653_p9 = pneg %p652_p3 }
  0xaf   : > { %916 = dma.done.wait (%p653_p9), %s464_s21, 128  }
  0xb0   : > { %918 = vsyncadd (%p653_p9), %s464_s21, 4294967168  ;;  %s473_s30 = scalar_lea.sflag [#allocation10], %s463_s14 }
  0xb1   : > { %920 = dma.done.wait (%p653_p9), %s473_s30, 128  }
  0xb2   : > { %922 = vsyncadd (%p653_p9), %s473_s30, 4294967168  ;;  %s27_s22 = sadd.s32 1, %s954_s22   ;;  %s1278_s5 = sld [smem:[#allocation15_spill]] }
  0xb3   : > { %p24_p10 = scmp.ge.s32.totalorder %s27_s22, 4   ;;  %s1279_s17 = sld [smem:[#allocation18_spill]] }
  0xb4   : > { %s1280_s20 = sld [smem:[#allocation16_spill]]  ;;  %s1282_s15 = smov %s930_s16 }
  0xb5   : > { %s1281_s21 = sld [smem:[#allocation17_spill]]  ;;  %s1284_s18 = smov %s942_s19 }
  0xb6   : > { %s1239_s19 = smov 0   ;;  %26 = sbr.rel (!%p24_p10) target bundleno = 13 (0xd), region = 122 }
  0xb8   : > { %s1283_s16 = smov %s1278_s5 }
  0xbb   :  { %478 = vsyncpa [#allocation3], 1 }
  0xbc   :  { %480 = vsyncpa [#allocation3 + $0x1], 1 }
  0xbd   :  { %481 = vsyncpa [#allocation6], 1 }
  0xbe   :  { %483 = vsyncpa [#allocation6 + $0x1], 1 }
  0xbf   :  { %484 = vsyncpa [#allocation4], 1 }
  0xc0   :  { %486 = vsyncpa [#allocation4 + $0x1], 1 }
  0xc1   :  { %487 = vsyncpa [#allocation10], 1 }
  0xc2   :  { %489 = vsyncpa [#allocation10 + $0x1], 1 }

</bundles_post_ra>
